<compile_context>
chip_gen: v6e
topology: v6e:2x2x1
jax: 0.10.0
libtpu: 0.0.40
codegen_flags: <defaults>
</compile_context>

<pallas_src>
from functools import partial

import jax
import jax.numpy as jnp
import numpy as np
from jax.experimental import pallas as pl
from jax.experimental.pallas import tpu as pltpu

K = 3          # conv kernel size (fixed by BasicConv usage in BasicBlock)
LANE = 128     # TPU lane width


# ----------------------------- kernel ---------------------------------------
def basic_block_kernel(x_ref, w1_ref, s1_ref, b1_ref, w2_ref, s2_ref, b2_ref,
                       o_ref, *, seq_len):
    """One row-tile (whole batch elements stacked along M) per grid step.

    x_ref : (TM, Cp)        input rows, channels-last, zero-padded to 128 lanes (io dtype)
    w1_ref: (3*Cp, Cp)      conv1 im2col weights (tap-major), MXU dtype
    s1/b1 : (1, Cp)         folded BN1 scale / shift (f32, zero on padded lanes)
    w2_ref: (3*Cp, Cp)      conv2 im2col weights
    s2/b2 : (1, Cp)         folded BN2 scale / shift
    o_ref : (TM, Cp)        io dtype
    """
    f32 = jnp.float32
    mxu_dtype = w1_ref.dtype

    x_io = x_ref[...]
    x_mxu = x_io.astype(mxu_dtype)        # im2col operand (no-op when io dtype == MXU dtype)
    x_res = x_io.astype(f32)              # residual identity kept in f32
    tm = x_mxu.shape[0]

    # Static per-row masks marking batch-element boundaries inside the tile
    # (tile always holds an integer number of length-`seq_len` sequences).
    row = jax.lax.broadcasted_iota(jnp.int32, (tm, 1), 0)
    pos = row % seq_len
    first = pos == 0                      # rows whose l-1 neighbour is out of range
    last = pos == seq_len - 1             # rows whose l+1 neighbour is out of range

    def conv3(a, w_ref):
        # Shifted neighbours via XLU roll + boundary mask, built in the MXU dtype.
        # pltpu.roll requires non-negative shifts: shift=tm-1 is rotation by -1.
        zero = jnp.zeros((), a.dtype)
        a_prev = jnp.where(first, zero, pltpu.roll(a, shift=1, axis=0))        # a[l-1]
        a_next = jnp.where(last, zero, pltpu.roll(a, shift=tm - 1, axis=0))    # a[l+1]
        # im2col: single MXU matmul with contraction dim 3*Cp, f32 accumulation.
        a_col = jnp.concatenate([a_prev, a, a_next], axis=1)                   # (TM, 3*Cp)
        return jnp.dot(a_col, w_ref[...], preferred_element_type=f32)

    # conv1 -> BN1 -> ReLU   (BN/ReLU in f32)
    h = jnp.maximum(conv3(x_mxu, w1_ref) * s1_ref[...] + b1_ref[...], 0.0)
    # conv2 -> BN2 -> residual add -> ReLU
    out = conv3(h.astype(mxu_dtype), w2_ref) * s2_ref[...] + b2_ref[...] + x_res
    o_ref[...] = jnp.maximum(out, 0.0).astype(o_ref.dtype)


# ----------------------------- wrapper helpers -------------------------------
def _round_up(x, m):
    return (x + m - 1) // m * m


def _pack_conv_weights(w_oik, cpi, cpo):
    """(O, I, K) PyTorch conv weights -> (K*Cpi, Cpo) im2col matrix, tap-major rows."""
    o, i, k = w_oik.shape
    w_kio = jnp.transpose(w_oik, (2, 1, 0))                        # (K, I, O)
    w_kio = jnp.pad(w_kio, ((0, 0), (0, cpi - i), (0, cpo - o)))
    return w_kio.reshape(k * cpi, cpo)


def _fold_bn_padded(gamma, beta, mean, var, *, eps, cpad):
    scale = gamma / jnp.sqrt(var + eps)
    shift = beta - mean * scale
    pad = cpad - gamma.shape[0]
    # zero scale/shift on padded lanes -> padded channels stay exactly 0
    return (jnp.pad(scale, (0, pad)).reshape(1, -1).astype(jnp.float32),
            jnp.pad(shift, (0, pad)).reshape(1, -1).astype(jnp.float32))


def _batch_group(n, l, target_rows, min_grid_steps):
    """Batch elements per grid step: divides N, keeps (nb*L) sublane-aligned,
    targets ~target_rows rows of M per step, and (when possible) leaves at least
    `min_grid_steps` grid steps so the parallel axis can shard across v7x cores."""
    limit = max(1, min(n, target_rows // max(l, 1)))
    limit = min(limit, max(1, n // max(min_grid_steps, 1)))
    for nb in range(limit, 0, -1):
        if n % nb == 0 and (nb * l) % 8 == 0:
            return nb
    return n  # single grid step: full-extent block, no (8,128) constraint


def _vmem_limit_bytes(tm, cpi, cpo, io_bytes, mxu_bytes):
    """Conservative per-step VMEM footprint (double-buffered I/O + weights + temps),
    with a 2x safety factor; clamped well under v7x's 64 MiB physical VMEM."""
    inout = 2 * tm * (cpi + cpo) * io_bytes                      # double-buffered in/out tiles
    weights = 2 * K * (cpi + cpo) * cpo * mxu_bytes              # w1 + w2 (double-buffered)
    scalars = 4 * cpo * 4
    # rough in-kernel temporaries: rolled copies + im2col buffer (MXU dtype), f32 h/acc/residual
    scratch = tm * (5 * cpi * mxu_bytes + cpi * 4 + 3 * cpo * 4)
    est = 2 * (inout + weights + scalars + scratch) + (4 << 20)
    return int(min(max(est, 16 << 20), 48 << 20))


def pack_basic_block_params(w1_oik, bn1, w2_oik, bn2, *, eps=1e-5,
                            mxu_dtype=jnp.bfloat16):
    """Pack conv weights (im2col, tap-major, lane-padded) and folded BN params once;
    reuse across calls / blocks."""
    cout, cin, _ = w1_oik.shape
    cpi = _round_up(cin, LANE)
    cpo = _round_up(cout, LANE)
    w1c = _pack_conv_weights(w1_oik, cpi, cpo).astype(mxu_dtype)
    w2c = _pack_conv_weights(w2_oik, cpo, cpo).astype(mxu_dtype)
    s1, b1 = _fold_bn_padded(*bn1, eps=eps, cpad=cpo)
    s2, b2 = _fold_bn_padded(*bn2, eps=eps, cpad=cpo)
    return (w1c, s1, b1, w2c, s2, b2)


# ----------------------------- public entry points ---------------------------
def basic_block_pallas_flat(x_flat, params, *, seq_len, target_rows=2048,
                            min_grid_steps=2):
    """Preferred entry point for stacked blocks: keeps the lane-padded (N*L, Cp)
    channels-last layout (bf16 recommended) resident between blocks — no wrapper-side
    pad / slice HBM passes. Returns (N*L, Cp) in x_flat.dtype."""
    w1c, s1, b1, w2c, s2, b2 = params
    m, cpi = x_flat.shape
    cpo = w1c.shape[1]
    assert m % seq_len == 0
    n = m // seq_len

    nb = _batch_group(n, seq_len, target_rows, min_grid_steps)
    tm = nb * seq_len
    grid = (n // nb,)

    io_bytes = jnp.dtype(x_flat.dtype).itemsize
    mxu_bytes = jnp.dtype(w1c.dtype).itemsize

    return pl.pallas_call(
        partial(basic_block_kernel, seq_len=seq_len),
        out_shape=jax.ShapeDtypeStruct((m, cpo), x_flat.dtype),
        grid=grid,
        in_specs=[
            pl.BlockSpec((tm, cpi), lambda g: (g, 0)),
            pl.BlockSpec((K * cpi, cpo), lambda g: (0, 0)),
            pl.BlockSpec((1, cpo), lambda g: (0, 0)),
            pl.BlockSpec((1, cpo), lambda g: (0, 0)),
            pl.BlockSpec((K * cpo, cpo), lambda g: (0, 0)),
            pl.BlockSpec((1, cpo), lambda g: (0, 0)),
            pl.BlockSpec((1, cpo), lambda g: (0, 0)),
        ],
        out_specs=pl.BlockSpec((tm, cpo), lambda g: (g, 0)),
        compiler_params=pltpu.CompilerParams(
            dimension_semantics=("parallel",),      # batch-group axis: megacore-shardable
            vmem_limit_bytes=_vmem_limit_bytes(tm, cpi, cpo, io_bytes, mxu_bytes),
        ),
    )(x_flat, w1c, s1, b1, w2c, s2, b2)


def basic_block_pallas_nlc(x_nlc, w1_oik, bn1, w2_oik, bn2, *, eps=1e-5,
                           mxu_dtype=jnp.bfloat16, io_dtype=jnp.bfloat16,
                           target_rows=2048, min_grid_steps=2):
    """Channels-last glue. x_nlc: (N, L, C). Returns (N, L, C) in x_nlc.dtype.
    For stacked blocks prefer basic_block_pallas_flat to avoid the pad/slice passes."""
    n, l, cin = x_nlc.shape
    cout = w1_oik.shape[0]
    assert cin == cout, "identity residual requires inplanes == planes (no downsample)"

    cpi = _round_up(cin, LANE)
    params = pack_basic_block_params(w1_oik, bn1, w2_oik, bn2, eps=eps,
                                     mxu_dtype=mxu_dtype)

    # activations: (N, L, C) -> (N*L, Cpad), lane-dense, io dtype (bf16 halves HBM traffic)
    x_flat = jnp.pad(x_nlc.reshape(n * l, cin),
                     ((0, 0), (0, cpi - cin))).astype(io_dtype)

    out_flat = basic_block_pallas_flat(x_flat, params, seq_len=l,
                                       target_rows=target_rows,
                                       min_grid_steps=min_grid_steps)
    return out_flat[:, :cout].astype(x_nlc.dtype).reshape(n, l, cout)


def basic_block_pallas(x_ncl, w1_oik, bn1, w2_oik, bn2, **kw):
    """PyTorch-layout glue: NCL in / NCL out. Keep a full network in (padded) NLC
    between blocks to avoid these HBM-side transposes."""
    x_nlc = jnp.transpose(x_ncl, (0, 2, 1))
    out_nlc = basic_block_pallas_nlc(x_nlc, w1_oik, bn1, w2_oik, bn2, **kw)
    return jnp.transpose(out_nlc, (0, 2, 1))


# ---------------- pure-JAX reference (for correctness check) -----------------
def basic_block_ref(x_ncl, w1, bn1, w2, bn2, eps=1e-5):
    def conv_bn(x, w, gamma, beta, mean, var, relu):
        y = jax.lax.conv_general_dilated(
            x, w, window_strides=(1,), padding=((1, 1),),
            dimension_numbers=("NCH", "OIH", "NCH"))
        scale = gamma / jnp.sqrt(var + eps)
        y = y * scale[None, :, None] + (beta - mean * scale)[None, :, None]
        return jnp.maximum(y, 0.0) if relu else y

    out = conv_bn(x_ncl, w1, *bn1, relu=True)
    out = conv_bn(out, w2, *bn2, relu=False)
    return jnp.maximum(out + x_ncl, 0.0)


if __name__ == "__main__":
    # Small shapes consistent with BasicBlock(inplanes=4, planes=4, stride=1, downsample=None)
    N, C, L = 2, 4, 16

    key = jax.random.PRNGKey(0)
    ks = jax.random.split(key, 11)

    x = jax.random.normal(ks[0], (N, C, L), dtype=jnp.float32)

    # conv weights in PyTorch (out_ch, in_ch, kernel) layout, bias=False
    w1 = 0.2 * jax.random.normal(ks[1], (C, C, K), dtype=jnp.float32)
    w2 = 0.2 * jax.random.normal(ks[2], (C, C, K), dtype=jnp.float32)

    # BatchNorm1d params / running stats (deterministic, non-trivial)
    bn1 = (1.0 + 0.1 * jax.random.normal(ks[3], (C,), dtype=jnp.float32),    # gamma
           0.05 * jax.random.normal(ks[4], (C,), dtype=jnp.float32),         # beta
           0.1 * jax.random.normal(ks[5], (C,), dtype=jnp.float32),          # running_mean
           0.5 + jnp.abs(jax.random.normal(ks[6], (C,), dtype=jnp.float32)))  # running_var
    bn2 = (1.0 + 0.1 * jax.random.normal(ks[7], (C,), dtype=jnp.float32),
           0.05 * jax.random.normal(ks[8], (C,), dtype=jnp.float32),
           0.1 * jax.random.normal(ks[9], (C,), dtype=jnp.float32),
           0.5 + jnp.abs(jax.random.normal(ks[10], (C,), dtype=jnp.float32)))

    ref = jax.block_until_ready(basic_block_ref(x, w1, bn1, w2, bn2))

    # strict numerical check: f32 MXU operands and f32 I/O
    out_f32 = jax.block_until_ready(
        basic_block_pallas(x, w1, bn1, w2, bn2,
                           mxu_dtype=jnp.float32, io_dtype=jnp.float32))
    np.testing.assert_allclose(np.asarray(out_f32), np.asarray(ref),
                               rtol=1e-4, atol=1e-4)

    # default perf path: bf16 I/O + bf16 MXU operands, f32 accumulation / BN / residual
    out_bf16 = jax.block_until_ready(basic_block_pallas(x, w1, bn1, w2, bn2))
    np.testing.assert_allclose(np.asarray(out_bf16), np.asarray(ref),
                               rtol=5e-2, atol=5e-2)

    print("KERNEL_OK")
</pallas_src>

<mosaic_0001>
module attributes {stable_mosaic.version = 11 : i64} {
  func.func @basic_block_kernel(%arg0: i32, %arg1: memref<16x128xf32, #tpu.memory_space<vmem>>, %arg2: memref<384x128xf32, #tpu.memory_space<vmem>>, %arg3: memref<1x128xf32, #tpu.memory_space<vmem>>, %arg4: memref<1x128xf32, #tpu.memory_space<vmem>>, %arg5: memref<384x128xf32, #tpu.memory_space<vmem>>, %arg6: memref<1x128xf32, #tpu.memory_space<vmem>>, %arg7: memref<1x128xf32, #tpu.memory_space<vmem>>, %arg8: memref<16x128xf32, #tpu.memory_space<vmem>>) attributes {dimension_semantics = [#tpu.dimension_semantics<parallel>], iteration_bounds = array<i64: 2>, scalar_prefetch = 0 : i64, scratch_operands = 0 : i64, tpu.core_type = #tpu.core_type<tc>, window_params = [{transform_indices = @transform_0, window_bounds = array<i64: 16, 128>}, {pipeline_mode = #tpu.pipeline_mode<synchronous>, transform_indices = @transform_1, window_bounds = array<i64: 384, 128>}, {pipeline_mode = #tpu.pipeline_mode<synchronous>, transform_indices = @transform_2, window_bounds = array<i64: 1, 128>}, {pipeline_mode = #tpu.pipeline_mode<synchronous>, transform_indices = @transform_3, window_bounds = array<i64: 1, 128>}, {pipeline_mode = #tpu.pipeline_mode<synchronous>, transform_indices = @transform_4, window_bounds = array<i64: 384, 128>}, {pipeline_mode = #tpu.pipeline_mode<synchronous>, transform_indices = @transform_5, window_bounds = array<i64: 1, 128>}, {pipeline_mode = #tpu.pipeline_mode<synchronous>, transform_indices = @transform_6, window_bounds = array<i64: 1, 128>}, {transform_indices = @transform_7, window_bounds = array<i64: 16, 128>}]} {
    %c0 = arith.constant 0 : index
    %c0_0 = arith.constant 0 : index
    %0 = vector.load %arg1[%c0, %c0_0] : memref<16x128xf32, #tpu.memory_space<vmem>>, vector<16x128xf32>
    %1 = tpu.iota {dimensions = array<i32: 0>} : vector<16x1xi32>
    %c16_i32 = arith.constant 16 : i32
    %c0_i32 = arith.constant 0 : i32
    %2 = arith.cmpi eq, %c16_i32, %c0_i32 : i32
    %c1_i32 = arith.constant 1 : i32
    %3 = arith.select %2, %c1_i32, %c16_i32 : i32
    %4 = vector.broadcast %3 : i32 to vector<16x1xi32>
    %5 = arith.remsi %1, %4 : vector<16x1xi32>
    %c0_i32_1 = arith.constant 0 : i32
    %6 = vector.broadcast %c0_i32_1 : i32 to vector<16x1xi32>
    %7 = arith.cmpi ne, %5, %6 : vector<16x1xi32>
    %c0_i32_2 = arith.constant 0 : i32
    %8 = vector.broadcast %c0_i32_2 : i32 to vector<16x1xi32>
    %9 = arith.cmpi slt, %5, %8 : vector<16x1xi32>
    %c0_i32_3 = arith.constant 0 : i32
    %10 = arith.cmpi slt, %3, %c0_i32_3 : i32
    %11 = vector.broadcast %10 : i1 to vector<16x1xi1>
    %12 = vector.broadcast %11 : vector<16x1xi1> to vector<16x1xi1>
    %13 = arith.xori %9, %12 : vector<16x1xi1>
    %14 = arith.andi %13, %7 : vector<16x1xi1>
    %15 = vector.broadcast %3 : i32 to vector<16x1xi32>
    %16 = arith.addi %5, %15 : vector<16x1xi32>
    %17 = arith.select %14, %16, %5 : vector<16x1xi1>, vector<16x1xi32>
    %c0_i32_4 = arith.constant 0 : i32
    %18 = vector.broadcast %c0_i32_4 : i32 to vector<16x1xi32>
    %19 = arith.cmpi eq, %17, %18 : vector<16x1xi32>
    %c15_i32 = arith.constant 15 : i32
    %20 = vector.broadcast %c15_i32 : i32 to vector<16x1xi32>
    %21 = arith.cmpi eq, %17, %20 : vector<16x1xi32>
    %c1_i32_5 = arith.constant 1 : i32
    %22 = tpu.dynamic_rotate %0 by %c1_i32_5 dim 0 : vector<16x128xf32>, i32 -> vector<16x128xf32>
    %cst = arith.constant 0.000000e+00 : f32
    %23 = vector.shape_cast %19 : vector<16x1xi1> to vector<16x1xi1>
    %24 = vector.broadcast %23 : vector<16x1xi1> to vector<16x128xi1>
    %25 = vector.broadcast %cst : f32 to vector<16x128xf32>
    %26 = arith.select %24, %25, %22 : vector<16x128xi1>, vector<16x128xf32>
    %c15_i32_6 = arith.constant 15 : i32
    %27 = tpu.dynamic_rotate %0 by %c15_i32_6 dim 0 : vector<16x128xf32>, i32 -> vector<16x128xf32>
    %cst_7 = arith.constant 0.000000e+00 : f32
    %28 = vector.shape_cast %21 : vector<16x1xi1> to vector<16x1xi1>
    %29 = vector.broadcast %28 : vector<16x1xi1> to vector<16x128xi1>
    %30 = vector.broadcast %cst_7 : f32 to vector<16x128xf32>
    %31 = arith.select %29, %30, %27 : vector<16x128xi1>, vector<16x128xf32>
    %32 = tpu.concatenate %26, %0, %31 in 1 : vector<16x128xf32>, vector<16x128xf32>, vector<16x128xf32> -> vector<16x384xf32>
    %c0_8 = arith.constant 0 : index
    %c0_9 = arith.constant 0 : index
    %33 = vector.load %arg2[%c0_8, %c0_9] : memref<384x128xf32, #tpu.memory_space<vmem>>, vector<384x128xf32>
    %cst_10 = arith.constant dense<0.000000e+00> : vector<16x128xf32>
    %34 = tpu.matmul %32, %33, %cst_10 {dimension_numbers = #tpu.dot_dimension_numbers<[1], [0], [0], [1], [0, 0, 1, 1], [], []>} : vector<16x384xf32>, vector<384x128xf32>, vector<16x128xf32> -> vector<16x128xf32>
    %c0_11 = arith.constant 0 : index
    %c0_12 = arith.constant 0 : index
    %35 = vector.load %arg3[%c0_11, %c0_12] : memref<1x128xf32, #tpu.memory_space<vmem>>, vector<1x128xf32>
    %36 = vector.broadcast %35 : vector<1x128xf32> to vector<16x128xf32>
    %37 = arith.mulf %34, %36 : vector<16x128xf32>
    %c0_13 = arith.constant 0 : index
    %c0_14 = arith.constant 0 : index
    %38 = vector.load %arg4[%c0_13, %c0_14] : memref<1x128xf32, #tpu.memory_space<vmem>>, vector<1x128xf32>
    %39 = vector.broadcast %38 : vector<1x128xf32> to vector<16x128xf32>
    %40 = arith.addf %37, %39 : vector<16x128xf32>
    %cst_15 = arith.constant 0.000000e+00 : f32
    %41 = vector.broadcast %cst_15 : f32 to vector<16x128xf32>
    %42 = arith.maximumf %40, %41 : vector<16x128xf32>
    %c1_i32_16 = arith.constant 1 : i32
    %43 = tpu.dynamic_rotate %42 by %c1_i32_16 dim 0 : vector<16x128xf32>, i32 -> vector<16x128xf32>
    %cst_17 = arith.constant 0.000000e+00 : f32
    %44 = vector.shape_cast %19 : vector<16x1xi1> to vector<16x1xi1>
    %45 = vector.broadcast %44 : vector<16x1xi1> to vector<16x128xi1>
    %46 = vector.broadcast %cst_17 : f32 to vector<16x128xf32>
    %47 = arith.select %45, %46, %43 : vector<16x128xi1>, vector<16x128xf32>
    %c15_i32_18 = arith.constant 15 : i32
    %48 = tpu.dynamic_rotate %42 by %c15_i32_18 dim 0 : vector<16x128xf32>, i32 -> vector<16x128xf32>
    %cst_19 = arith.constant 0.000000e+00 : f32
    %49 = vector.shape_cast %21 : vector<16x1xi1> to vector<16x1xi1>
    %50 = vector.broadcast %49 : vector<16x1xi1> to vector<16x128xi1>
    %51 = vector.broadcast %cst_19 : f32 to vector<16x128xf32>
    %52 = arith.select %50, %51, %48 : vector<16x128xi1>, vector<16x128xf32>
    %53 = tpu.concatenate %47, %42, %52 in 1 : vector<16x128xf32>, vector<16x128xf32>, vector<16x128xf32> -> vector<16x384xf32>
    %c0_20 = arith.constant 0 : index
    %c0_21 = arith.constant 0 : index
    %54 = vector.load %arg5[%c0_20, %c0_21] : memref<384x128xf32, #tpu.memory_space<vmem>>, vector<384x128xf32>
    %cst_22 = arith.constant dense<0.000000e+00> : vector<16x128xf32>
    %55 = tpu.matmul %53, %54, %cst_22 {dimension_numbers = #tpu.dot_dimension_numbers<[1], [0], [0], [1], [0, 0, 1, 1], [], []>} : vector<16x384xf32>, vector<384x128xf32>, vector<16x128xf32> -> vector<16x128xf32>
    %c0_23 = arith.constant 0 : index
    %c0_24 = arith.constant 0 : index
    %56 = vector.load %arg6[%c0_23, %c0_24] : memref<1x128xf32, #tpu.memory_space<vmem>>, vector<1x128xf32>
    %57 = vector.broadcast %56 : vector<1x128xf32> to vector<16x128xf32>
    %58 = arith.mulf %55, %57 : vector<16x128xf32>
    %c0_25 = arith.constant 0 : index
    %c0_26 = arith.constant 0 : index
    %59 = vector.load %arg7[%c0_25, %c0_26] : memref<1x128xf32, #tpu.memory_space<vmem>>, vector<1x128xf32>
    %60 = vector.broadcast %59 : vector<1x128xf32> to vector<16x128xf32>
    %61 = arith.addf %58, %60 : vector<16x128xf32>
    %62 = arith.addf %61, %0 : vector<16x128xf32>
    %cst_27 = arith.constant 0.000000e+00 : f32
    %63 = vector.broadcast %cst_27 : f32 to vector<16x128xf32>
    %64 = arith.maximumf %62, %63 : vector<16x128xf32>
    %c0_28 = arith.constant 0 : index
    %c0_29 = arith.constant 0 : index
    %65 = vector.load %arg8[%c0_28, %c0_29] : memref<16x128xf32, #tpu.memory_space<vmem>>, vector<16x128xf32>
    tpu.vector_store %arg8[%c0_28, %c0_29], %64 {strides = array<i32>} : memref<16x128xf32, #tpu.memory_space<vmem>>, vector<16x128xf32>,
    return
  }
  func.func @transform_0(%arg0: i32) -> (i32, i32) {
    %c0_i32 = arith.constant 0 : i32
    %c0_i32_0 = arith.constant 0 : i32
    return %arg0, %c0_i32 : i32, i32
  }
  func.func @transform_1(%arg0: i32) -> (i32, i32) {
    %c0_i32 = arith.constant 0 : i32
    %c0_i32_0 = arith.constant 0 : i32
    %c0_i32_1 = arith.constant 0 : i32
    return %c0_i32, %c0_i32_0 : i32, i32
  }
  func.func @transform_2(%arg0: i32) -> (i32, i32) {
    %c0_i32 = arith.constant 0 : i32
    %c0_i32_0 = arith.constant 0 : i32
    %c0_i32_1 = arith.constant 0 : i32
    return %c0_i32, %c0_i32_0 : i32, i32
  }
  func.func @transform_3(%arg0: i32) -> (i32, i32) {
    %c0_i32 = arith.constant 0 : i32
    %c0_i32_0 = arith.constant 0 : i32
    %c0_i32_1 = arith.constant 0 : i32
    return %c0_i32, %c0_i32_0 : i32, i32
  }
  func.func @transform_4(%arg0: i32) -> (i32, i32) {
    %c0_i32 = arith.constant 0 : i32
    %c0_i32_0 = arith.constant 0 : i32
    %c0_i32_1 = arith.constant 0 : i32
    return %c0_i32, %c0_i32_0 : i32, i32
  }
  func.func @transform_5(%arg0: i32) -> (i32, i32) {
    %c0_i32 = arith.constant 0 : i32
    %c0_i32_0 = arith.constant 0 : i32
    %c0_i32_1 = arith.constant 0 : i32
    return %c0_i32, %c0_i32_0 : i32, i32
  }
  func.func @transform_6(%arg0: i32) -> (i32, i32) {
    %c0_i32 = arith.constant 0 : i32
    %c0_i32_0 = arith.constant 0 : i32
    %c0_i32_1 = arith.constant 0 : i32
    return %c0_i32, %c0_i32_0 : i32, i32
  }
  func.func @transform_7(%arg0: i32) -> (i32, i32) {
    %c0_i32 = arith.constant 0 : i32
    %c0_i32_0 = arith.constant 0 : i32
    return %arg0, %c0_i32 : i32, i32
  }
}

</mosaic_0001>

<bundles_post_ra>
// kernel: tpu_custom_call.1
= control target key start
LH: loop header
LB: loop body
LE: loop exit
PB: predicated region body
PF: predicated region fallthrough
CT: control target
= control target key end

     0   :  { %s1693_s0 = inlined_call_operand.hbm [shape: f32[32,128], index: 0, kind: input, shape index: {}]   ;;  %s1694_s1 = inlined_call_operand.hbm [shape: f32[384,128], index: 1, kind: input, shape index: {}]   ;;  %s1695_s2 = inlined_call_operand.vmem [shape: f32[1,128], index: 2, kind: input, shape index: {}]   ;;  %s1696_s3 = inlined_call_operand.vmem [shape: f32[1,128], index: 3, kind: input, shape index: {}]   ;;  %s1697_s4 = inlined_call_operand.hbm [shape: f32[384,128], index: 4, kind: input, shape index: {}]   ;;  %s1698_s5 = inlined_call_operand.vmem [shape: f32[1,128], index: 5, kind: input, shape index: {}]   ;;  %s1699_s6 = inlined_call_operand.vmem [shape: f32[1,128], index: 6, kind: input, shape index: {}]   ;;  %s1700_s7 = inlined_call_operand.hbm [shape: f32[32,128], index: 7, kind: output, shape index: {}]  }
   0x1   :  { %1707 = sst [smem:[#allocation12_spill]] %s1694_s1 }
   0x2   :  { %12 = vsyncpa [#allocation3], 0 }
   0x3   :  { %14 = vsyncpa [#allocation3 + $0x1], 0 }
   0x4   :  { %15 = vsyncpa [#allocation6], 0 }
   0x5   :  { %16 = vsyncpa [#allocation4], 0 }
   0x6   :  { %18 = vsyncpa [#allocation4 + $0x1], 0  ;;  %s1426_s24 = smov 0   ;;  %s1428_s25 = smov 0  }
   0x7   :  { %s1430_s26 = smov 0   ;;  %s1432_s27 = smov 0  }
   0x8 LB: > { %s1447_s28 = sadd.s32 4294967295, %s1376_s27   ;;  %s941_s29 = sadd.s32 4294967294, %s1376_s27   ;;  %s1376_s27 = sphi %s1432_s27, %s1731_s27   ;;  %s1372_s26 = sphi %s1430_s26, %s1730_s26   ;;  %s1368_s25 = sphi %s1428_s25, %s1729_s25   ;;  %s1364_s24 = sphi %s1426_s24, %s1728_s24  }
   0x9   : > { %p44_p0 = scmp.ne.s32.totalorder %s1368_s25, %s1364_s24  ;;  %p1702_p1 = scmp.eq.s32.totalorder %s1447_s28, 0 }
   0xa   : > { %p194_p2 = scmp.eq.s32.totalorder %s1447_s28, 1  ;;  %p200_p3 = scmp.eq.s32.totalorder %s941_s29, 1 }
   0xb   : > { %p1456_p4 = por %p1702_p1, %p44_p0  ;;  %p942_p5 = scmp.ge.s32.totalorder %s1376_s27, 1 }
   0xc   : > { %p1461_p6 = por %p200_p3, %p44_p0  ;;  %p207_p7 = scmp.lt.s32.totalorder %s1376_s27, 3 }
   0xd   : > { %s1708_s30 = scalar_select %p1456_p4, 1, 0 }
   0xe   : > { %s1709_s8 = scalar_select %p1461_p6, 1, 0 }
   0xf   : > { %p1466_p8 = pnand %p942_p5, %p207_p7  ;;  %s1378_s10 = smov [#allocation5]  }
  0x10   : > { %s219_s11 = sshll.u32 %s1378_s10, 4  ;;  %s1379_s13 = smov [#allocation7]   ;;  %s220_s11 = int_to_ptr.vmem [resolvable:$true] %s219_s11 }
  0x11   : > { %s1710_s9 = scalar_select %p1466_p8, 1, 0 }
  0x12   : > { %p1169_p9 = pneg %p1466_p8  ;;  %s238_s14 = sshll.u32 %s1379_s13, 4  ;;  %s239_s14 = int_to_ptr.vmem [resolvable:$true] %s238_s14 }
  0x13   : > { %s1239_s15 = scalar_lea.vmem %s220_s11, 6144  ;;  %p1247_p5 = scmp.lt.s32.totalorder %s220_s11, %s220_s11 }
  0x14   : > { %p1475_p11 = pnand %p1169_p9, %p1702_p1  ;;  %p1240_p13 = scmp.ne.s32.totalorder %s220_s11, %s1239_s15 }
  0x15   : > { %p1248_p7 = scmp.lt.s32.totalorder %s1239_s15, %s1239_s15 }
  0x16   : > { %p1230_p12 = pneg %p1475_p11 }
  0x17   : > { %p1249_p10 = por %p1248_p7, %p1247_p5 }
  0x18   : > { %p1242_p0 = pnand %p1240_p13, %p1230_p12 }
  0x1a   : > { %p1243_p3 = pneg %p1242_p0 }
  0x1c   : > { %p1250_p9 = pnand %p1249_p10, %p1243_p3 }
  0x1e   : > { %1253 = shalt.err (!%p1250_p9)
}
  0x1f   : > { %s1701_s16 = smov 128   ;;  %s1703_s17 = smov 8  }
  0x20   : > { %s1712_s1 = sld [smem:[#allocation12_spill]]  ;;  %s1265_s20 = scalar_lea.vmem %s239_s14, 6144 }
  0x21   : > { %p1266_p13 = scmp.ne.s32.totalorder %s239_s14, %s1265_s20  ;;  %p1273_p10 = scmp.lt.s32.totalorder %s239_s14, %s239_s14 }
  0x22   : > { %p1274_p3 = scmp.lt.s32.totalorder %s1265_s20, %s1265_s20 }
  0x23   : > { %p1268_p0 = pnand %p1266_p13, %p1230_p12 }
  0x24   : > { %p1275_p7 = por %p1274_p3, %p1273_p10 }
  0x25   : > { %p1269_p5 = pneg %p1268_p0 }
  0x26   : > { %1172 = dma.hbm_to_vmem [thread:$0]  (!%p1475_p11), %s1712_s1, 6144, %s220_s11, [#allocation6], %s1701_s16, %s1701_s16, %s1703_s17  }
  0x27   : > { %p1276_p9 = pnand %p1275_p7, %p1269_p5 }
  0x29   : > { %1279 = shalt.err (!%p1276_p9)
}
  0x2a   : > { %1175 = dma.hbm_to_vmem [thread:$0]  (!%p1475_p11), %s1697_s4, 6144, %s239_s14, [#allocation6], %s1701_s16, %s1701_s16, %s1703_s17  }
  0x2b   : > { %s1504_s23 = sadd.s32 1, %s1376_s27   ;;  %s31_s29 = sadd.s32 1, %s1372_s26 }
  0x2c   : > { %s28_s10 = ssub.s32 %s1376_s27, %s1504_s23  ;;  %p38_p12 = scmp.ne.s32.totalorder %s1372_s26, %s1368_s25 }
  0x2d   : > { %p29_p13 = scmp.eq.s32.totalorder %s28_s10, 0  ;;  %p39_p0 = scmp.eq.s32.totalorder %s1376_s27, 0 }
  0x2e   : > { %p1514_p5 = por %p194_p2, %p38_p12  ;;  %p1186_p10 = scmp.lt.s32.totalorder %s1376_s27, 2 }
  0x2f   : > { %s1520_s12 = scalar_select %p29_p13, %s1372_s26, %s31_s29  }
  0x30   : > { %s1713_s11 = scalar_select %p1514_p5, 1, 0 }
  0x31   : > { %p40_p3 = por %p39_p0, %p38_p12  ;;  %s258_s13 = sand.u32 1, %s1372_s26  }
  0x32   : > { %s946_s15 = sshll.u32 %s258_s13, 4  ;;  %s971_s14 = sshll.u32 %s1376_s27, 8 }
  0x33   : > { %s1527_s20 = scalar_lea.hbm %s1693_s0, %s971_s14  ;;  %s262_s21 = scalar_lea.vmem [#allocation2], %s946_s15 }
  0x34   : > { %s269_s22 = sshll.u32 %s262_s21, 4  ;;  %p1531_p2 = pnand %p1186_p10, %p40_p3  ;;  %s1529_s22 = int_to_ptr.vmem [resolvable:$true] %s269_s22 }
  0x35   : > { %s1535_s29 = scalar_lea.sflag [#allocation3], %s258_s13  ;;  %s1280_s16 = scalar_lea.hbm %s1527_s20, 256 }
  0x36   : > { %p1281_p11 = scmp.ne.s32.totalorder %s1527_s20, %s1280_s16  ;;  %p1282_p7 = pneg %p1531_p2 }
  0x37   : > { %s1285_s15 = scalar_lea.hbm %s1693_s0, 512  ;;  %p1286_p13 = scmp.lt.s32.totalorder %s1527_s20, %s1693_s0 }
  0x38   : > { %p1283_p9 = pnand %p1282_p7, %p1281_p11  ;;  %p1287_p0 = scmp.lt.s32.totalorder %s1285_s15, %s1280_s16 }
  0x3a   : > { %p1284_p12 = pneg %p1283_p9  ;;  %p1288_p10 = por %p1287_p0, %p1286_p13 }
  0x3c   : > { %p1289_p3 = pnand %p1288_p10, %p1284_p12 }
  0x3e   : > { %1292 = shalt.err (!%p1289_p3)
}
  0x3f   : > { %s1293_s13 = scalar_lea.vmem %s1529_s22, 256  ;;  %s1382_s17 = smov [#allocation2]  }
  0x40   : > { %p1294_p1 = scmp.ne.s32.totalorder %s1529_s22, %s1293_s13  ;;  %s1298_s1 = sshll.u32 %s1382_s17, 4  ;;  %s1299_s1 = int_to_ptr.vmem [resolvable:$false] %s1298_s1 }
  0x41   : > { %s1300_s14 = scalar_lea.vmem %s1299_s1, 512  ;;  %p1301_p9 = scmp.lt.s32.totalorder %s1529_s22, %s1299_s1 }
  0x42   : > { %p1296_p6 = pnand %p1294_p1, %p1282_p7  ;;  %p1302_p5 = scmp.lt.s32.totalorder %s1300_s14, %s1293_s13 }
  0x44   : > { %p1297_p11 = pneg %p1296_p6  ;;  %p1303_p4 = por %p1302_p5, %p1301_p9 }
  0x46   : > { %p1304_p8 = pnand %p1303_p4, %p1297_p11 }
  0x48   : > { %1307 = shalt.err (!%p1304_p8)
}
  0x49   : > { %s1715_s16 = smov 8   ;;  %s1716_s18 = smov 128  }
  0x4a   : > { %1179 = dma.hbm_to_vmem [thread:$0]  (!%p1531_p2), %s1527_s20, 256, %s1529_s22, %s1535_s29, %s1716_s18, %s1716_s18, %s1715_s16  }
  0x4b   : > { %p1717_p1 = scmp.ne.s32.totalorder %s1710_s9, 0 }
  0x4c   : > { %s1562_s17 = sand.u32 (!%p1717_p1), 1, %s1368_s25   ;;  %p1718_p4 = scmp.ne.s32.totalorder (!%p1717_p1), %s1708_s30, 0 }
  0x4d   : > { %281 = sbr.rel (%p1717_p1) target bundleno = 556 (0x22c), region = 48  ;;  %s950_s1 = sshll.u32 (!%p1717_p1), %s1562_s17, 4 }
  0x4e   : > { %s284_s15 = scalar_lea.sflag (!%p1717_p1), [#allocation3], %s1562_s17  ;;  %s1568_s10 = scalar_lea.vmem (!%p1717_p1), [#allocation2], %s950_s1 }
  0x52   : > { %1351 = dma.done.wait (%p1718_p4), %s284_s15, 256  }
  0x53   : > { %1353 = vsyncadd (%p1718_p4), %s284_s15, 4294967040  ;;  %p1719_p6 = scmp.eq.s32.totalorder %s1447_s28, 0 }
  0x55   : > { %1355 = dma.done.wait (%p1719_p6), [#allocation6], 12288   ;;  %p1720_p8 = pmov %p1719_p6 }
  0x56   : > { %v414_v0 = vld [vmem:[#allocation5 + $0xf8] sm:$0xff]  ;;  %v413_v2 = vld [vmem:[#allocation5 + $0xf0] sm:$0xff]  ;;  %v412_v5 = vld [vmem:[#allocation5 + $0xe8] sm:$0xff]  ;;  %v330_v28 = vlaneseq  ;;  %s972_s14 = sshll.u32 %s1447_s28, 8  ;;  %s325_s16 = scalar_lea.vmem [#allocation8], %s950_s1 }
  0x57   : > { %1357 = vsyncadd (%p1720_p8), [#allocation6], 4294955008  ;;  %v398_v1 = vld [vmem:[#allocation5 + $0x78] sm:$0xff]  ;;  %975 = vmatprep.subr.mxu0 %v414_v0  ;;  %v397_v4 = vld [vmem:[#allocation5 + $0x70] sm:$0xff]  ;;  %s849_s18 = sshll.u32 %s325_s16, 4  ;;  %s1648_s30 = scalar_lea.hbm %s1700_s7, %s972_s14  ;;  %s1650_s18 = int_to_ptr.vmem [resolvable:$true] %s849_s18 }
  0x58   : > { %v430_v3 = vld [vmem:[#allocation5 + $0x178] sm:$0xff]  ;;  %976 = vmatpush3.msra.mxu0 %v398_v1  ;;  %v429_v6 = vld [vmem:[#allocation5 + $0x170] sm:$0xff]  ;;  %v396_v7 = vld [vmem:[#allocation5 + $0x68] sm:$0xff]  ;;  %v1578_v35 = vshrl.u32 %v330_v28, 7  ;;  %s836_s9 = scalar_lea.sflag [#allocation4], %s1562_s17  ;;  %s1308_s28 = scalar_lea.vmem %s1650_s18, 256 }
  0x59   : > { %1087 = vmatprep.subr.mxu1 %v430_v3  ;;  %977 = vmatprep.subr.mxu0 %v413_v2  ;;  %v428_v8 = vld [vmem:[#allocation5 + $0x168] sm:$0xff]  ;;  %v411_v9 = vld [vmem:[#allocation5 + $0xe0] sm:$0xff]  ;;  %v410_v12 = vld [vmem:[#allocation5 + $0xd8] sm:$0xff]  ;;  %p1309_p5 = scmp.ne.s32.totalorder %s1650_s18, %s1308_s28  ;;  %p1725_p2 = scmp.ne.s32.totalorder %s1713_s11, 0 }
  0x5a   : > { %1088 = vmatpush3.msra.mxu1 %v430_v3  ;;  %978 = vmatpush3.msra.mxu0 %v397_v4  ;;  %v395_v10 = vld [vmem:[#allocation5 + $0x60] sm:$0xff]  ;;  %v394_v13 = vld [vmem:[#allocation5 + $0x58] sm:$0xff]  ;;  %v409_v15 = vld [vmem:[#allocation5 + $0xd0] sm:$0xff]  ;;  %v332_v44 = vadd.s32 8, %v1578_v35  ;;  %v337_v49 = vand.u32 15, %v1578_v35  ;;  %vm363_vm0 = vcmp.lt.s32.totalorder %v1578_v35, 1 }
  0x5b   : > { %1089 = vmatprep.subr.mxu1 %v429_v6  ;;  %979 = vmatprep.subr.mxu0 %v412_v5  ;;  %v427_v11 = vld [vmem:[#allocation5 + $0x160] sm:$0xff]  ;;  %v426_v14 = vld [vmem:[#allocation5 + $0x158] sm:$0xff]  ;;  %v393_v16 = vld [vmem:[#allocation5 + $0x50] sm:$0xff]  ;;  %vm374_vm1 = vcmp.lt.s32.totalorder %v1578_v35, 7  ;;  %p1310_p7 = pnand %p1309_p5, %p1725_p2  ;;  %s1383_s1 = smov [#allocation8]  }
  0x5c   : > { %1090 = vmatpush3.msra.mxu1 %v429_v6  ;;  %980 = vmatpush3.msra.mxu0 %v396_v7  ;;  %v425_v17 = vld [vmem:[#allocation5 + $0x150] sm:$0xff]  ;;  %v408_v18 = vld [vmem:[#allocation5 + $0xc8] sm:$0xff]  ;;  %v407_v21 = vld [vmem:[#allocation5 + $0xc0] sm:$0xff]  ;;  %v344_v56 = vand.u32 15, %v332_v44  ;;  %vm1596_vm2 = vcmp.ne.s32.totalorder %v337_v49, 0  ;;  %s1312_s20 = sshll.u32 %s1383_s1, 4  ;;  %s1313_s20 = int_to_ptr.vmem [resolvable:$false] %s1312_s20 }
  0x5d   : > { %1091 = vmatprep.subr.mxu1 %v428_v8  ;;  %981 = vmatprep.subr.mxu0 %v411_v9  ;;  %v392_v19 = vld [vmem:[#allocation5 + $0x48] sm:$0xff]  ;;  %v391_v22 = vld [vmem:[#allocation5 + $0x40] sm:$0xff]  ;;  %v406_v24 = vld [vmem:[#allocation5 + $0xb8] sm:$0xff]  ;;  %p1311_p12 = pneg %p1310_p7  ;;  %s1314_s22 = scalar_lea.vmem %s1313_s20, 512 }
  0x5e   : > { %1092 = vmatpush3.msra.mxu1 %v428_v8  ;;  %982 = vmatpush3.msra.mxu0 %v395_v10  ;;  %v424_v20 = vld [vmem:[#allocation5 + $0x148] sm:$0xff]  ;;  %v423_v23 = vld [vmem:[#allocation5 + $0x140] sm:$0xff]  ;;  %v390_v25 = vld [vmem:[#allocation5 + $0x38] sm:$0xff]  ;;  %vm1605_vm3 = vcmp.ne.s32.totalorder %v344_v56, 15  ;;  %p1315_p13 = scmp.lt.s32.totalorder %s1650_s18, %s1313_s20  ;;  %p1316_p0 = scmp.lt.s32.totalorder %s1314_s22, %s1308_s28 }
  0x5f   : > { %1093 = vmatprep.subr.mxu1 %v427_v11  ;;  %983 = vmatprep.subr.mxu0 %v410_v12  ;;  %v422_v26 = vld [vmem:[#allocation5 + $0x138] sm:$0xff]  ;;  %v405_v27 = vld [vmem:[#allocation5 + $0xb0] sm:$0xff]  ;;  %v404_v31 = vld [vmem:[#allocation5 + $0xa8] sm:$0xff] }
  0x60   : > { %1094 = vmatpush3.msra.mxu1 %v427_v11  ;;  %984 = vmatpush3.msra.mxu0 %v394_v13  ;;  %v389_v29 = vld [vmem:[#allocation5 + $0x30] sm:$0xff]  ;;  %v388_v32 = vld [vmem:[#allocation5 + $0x28] sm:$0xff]  ;;  %v403_v34 = vld [vmem:[#allocation5 + $0xa0] sm:$0xff]  ;;  %p1317_p10 = por %p1316_p0, %p1315_p13 }
  0x61   : > { %1095 = vmatprep.subr.mxu1 %v426_v14  ;;  %985 = vmatprep.subr.mxu0 %v409_v15  ;;  %v421_v30 = vld [vmem:[#allocation5 + $0x130] sm:$0xff]  ;;  %v420_v33 = vld [vmem:[#allocation5 + $0x128] sm:$0xff]  ;;  %v387_v36 = vld [vmem:[#allocation5 + $0x20] sm:$0xff] }
  0x62   : > { %1096 = vmatpush3.msra.mxu1 %v426_v14  ;;  %986 = vmatpush3.msra.mxu0 %v393_v16  ;;  %v419_v37 = vld [vmem:[#allocation5 + $0x120] sm:$0xff]  ;;  %v402_v38 = vld [vmem:[#allocation5 + $0x98] sm:$0xff]  ;;  %v401_v43 = vld [vmem:[#allocation5 + $0x90] sm:$0xff]  ;;  %p1318_p3 = pnand %p1317_p10, %p1311_p12 }
  0x63   : > { %1097 = vmatprep.subr.mxu1 %v425_v17  ;;  %987 = vmatprep.subr.mxu0 %v408_v18  ;;  %v386_v39 = vld [vmem:[#allocation5 + $0x18] sm:$0xff]  ;;  %v1581_v41 = vld [vmem:[%s1568_s10] sm:$0xff]  ;;  %v400_v47 = vld [vmem:[#allocation5 + $0x88] sm:$0xff] }
  0x64   : > { %1098 = vmatpush3.msra.mxu1 %v425_v17  ;;  %988 = vmatpush3.msra.mxu0 %v392_v19  ;;  %v418_v40 = vld [vmem:[#allocation5 + $0x118] sm:$0xff]  ;;  %v385_v45 = vld [vmem:[#allocation5 + $0x10] sm:$0xff]  ;;  %v361_v48 = vrot.slane %v1581_v41, 7  ;;  %v384_v51 = vld [vmem:[#allocation5 + $0x8] sm:$0xff]  ;;  %v372_v53 = vrot.slane %v1581_v41, 1 }
  0x65   : > { %1099 = vmatprep.subr.mxu1 %v424_v20  ;;  %989 = vmatprep.subr.mxu0 %v407_v21  ;;  %v1584_v42 = vld [vmem:[%s1568_s10 + $0x8] sm:$0xff]  ;;  %v417_v46 = vld [vmem:[#allocation5 + $0x110] sm:$0xff]  ;;  %v399_v55 = vld [vmem:[#allocation5 + $0x80] sm:$0xff] }
  0x66   : > { %1100 = vmatpush3.msra.mxu1 %v424_v20  ;;  %990 = vmatpush3.msra.mxu0 %v391_v22  ;;  %v362_v50 = vrot.slane %v1584_v42, 7  ;;  %v416_v52 = vld [vmem:[#allocation5 + $0x108] sm:$0xff]  ;;  %v373_v54 = vrot.slane %v1584_v42, 1  ;;  %v383_v57 = vld [vmem:[#allocation5] sm:$0xff]  ;;  %v644_v0 = vld [vmem:[#allocation7 + $0xf8] sm:$0xff] }
  0x67   : > { %1101 = vmatprep.subr.mxu1 %v423_v23  ;;  %991 = vmatprep.subr.mxu0 %v406_v24  ;;  %v415_v60 = vld [vmem:[#allocation5 + $0x100] sm:$0xff]  ;;  %v660_v1 = vld [vmem:[#allocation7 + $0x178] sm:$0xff]  ;;  %v659_v4 = vld [vmem:[#allocation7 + $0x170] sm:$0xff] }
  0x68   : > { %1102 = vmatpush3.msra.mxu1 %v423_v23  ;;  %992 = vmatpush3.msra.mxu0 %v390_v25  ;;  %v365_v58 = vsel %vm363_vm0, %v362_v50, %v361_v48  ;;  %v375_v61 = vsel %vm374_vm1, %v372_v53, %v373_v54  ;;  %v376_v62 = vsel %vm374_vm1, %v373_v54, %v372_v53  ;;  %v628_v3 = vld [vmem:[#allocation7 + $0x78] sm:$0xff]  ;;  %v643_v5 = vld [vmem:[#allocation7 + $0xf0] sm:$0xff]  ;;  %v658_v7 = vld [vmem:[#allocation7 + $0x168] sm:$0xff] }
  0x69   : > { %1103 = vmatprep.subr.mxu1 %v422_v26  ;;  %993 = vmatprep.subr.mxu0 %v405_v27  ;;  %v364_v2 = vsel %vm363_vm0, %v361_v48, %v362_v50  ;;  %v627_v6 = vld [vmem:[#allocation7 + $0x70] sm:$0xff]  ;;  %v642_v8 = vld [vmem:[#allocation7 + $0xe8] sm:$0xff]  ;;  %v657_v10 = vld [vmem:[#allocation7 + $0x160] sm:$0xff] }
  0x6a   : > { %1104 = vmatpush3.msra.mxu1 %v422_v26  ;;  %994 = vmatpush3.msra.mxu0 %v389_v29  ;;  %v626_v9 = vld [vmem:[#allocation7 + $0x68] sm:$0xff]  ;;  %v641_v11 = vld [vmem:[#allocation7 + $0xe0] sm:$0xff]  ;;  %v656_v13 = vld [vmem:[#allocation7 + $0x158] sm:$0xff] }
  0x6b   : > { %1105 = vmatprep.subr.mxu1 %v421_v30  ;;  %995 = vmatprep.subr.mxu0 %v404_v31  ;;  %v625_v12 = vld [vmem:[#allocation7 + $0x60] sm:$0xff]  ;;  %v640_v14 = vld [vmem:[#allocation7 + $0xd8] sm:$0xff]  ;;  %v655_v16 = vld [vmem:[#allocation7 + $0x150] sm:$0xff] }
  0x6c   : > { %1106 = vmatpush3.msra.mxu1 %v421_v30  ;;  %996 = vmatpush3.msra.mxu0 %v388_v32  ;;  %v624_v15 = vld [vmem:[#allocation7 + $0x58] sm:$0xff]  ;;  %v639_v17 = vld [vmem:[#allocation7 + $0xd0] sm:$0xff]  ;;  %v638_v19 = vld [vmem:[#allocation7 + $0xc8] sm:$0xff] }
  0x6d   : > { %1107 = vmatprep.subr.mxu1 %v420_v33  ;;  %997 = vmatprep.subr.mxu0 %v403_v34  ;;  %v623_v18 = vld [vmem:[#allocation7 + $0x50] sm:$0xff]  ;;  %v622_v20 = vld [vmem:[#allocation7 + $0x48] sm:$0xff]  ;;  %v637_v22 = vld [vmem:[#allocation7 + $0xc0] sm:$0xff] }
  0x6e   : > { %1108 = vmatpush3.msra.mxu1 %v420_v33  ;;  %998 = vmatpush3.msra.mxu0 %v387_v36  ;;  %v654_v21 = vld [vmem:[#allocation7 + $0x148] sm:$0xff]  ;;  %v621_v23 = vld [vmem:[#allocation7 + $0x40] sm:$0xff]  ;;  %v636_v25 = vld [vmem:[#allocation7 + $0xb8] sm:$0xff] }
  0x6f   : > { %1109 = vmatprep.subr.mxu1 %v419_v37  ;;  %999 = vmatprep.subr.mxu0 %v402_v38  ;;  %v653_v24 = vld [vmem:[#allocation7 + $0x140] sm:$0xff]  ;;  %v620_v26 = vld [vmem:[#allocation7 + $0x38] sm:$0xff]  ;;  %v635_v28 = vld [vmem:[#allocation7 + $0xb0] sm:$0xff] }
  0x70   : > { %1110 = vmatpush3.msra.mxu1 %v419_v37  ;;  %1000 = vmatpush3.msra.mxu0 %v386_v39  ;;  %v652_v27 = vld [vmem:[#allocation7 + $0x138] sm:$0xff]  ;;  %v619_v29 = vld [vmem:[#allocation7 + $0x30] sm:$0xff]  ;;  %v634_v31 = vld [vmem:[#allocation7 + $0xa8] sm:$0xff] }
  0x71   : > { %1111 = vmatprep.subr.mxu1 %v418_v40  ;;  %1001 = vmatprep.subr.mxu0 %v401_v43  ;;  %v651_v30 = vld [vmem:[#allocation7 + $0x130] sm:$0xff]  ;;  %v618_v32 = vld [vmem:[#allocation7 + $0x28] sm:$0xff]  ;;  %v633_v34 = vld [vmem:[#allocation7 + $0xa0] sm:$0xff] }
  0x72   : > { %1112 = vmatpush3.msra.mxu1 %v418_v40  ;;  %1002 = vmatpush3.msra.mxu0 %v385_v45  ;;  %v650_v33 = vld [vmem:[#allocation7 + $0x128] sm:$0xff]  ;;  %v617_v36 = vld [vmem:[#allocation7 + $0x20] sm:$0xff]  ;;  %v632_v38 = vld [vmem:[#allocation7 + $0x98] sm:$0xff] }
  0x73   : > { %1113 = vmatprep.subr.mxu1 %v417_v46  ;;  %1003 = vmatprep.subr.mxu0 %v400_v47  ;;  %v649_v37 = vld [vmem:[#allocation7 + $0x120] sm:$0xff]  ;;  %v616_v39 = vld [vmem:[#allocation7 + $0x18] sm:$0xff]  ;;  %v631_v43 = vld [vmem:[#allocation7 + $0x90] sm:$0xff] }
  0x74   : > { %1114 = vmatpush3.msra.mxu1 %v417_v46  ;;  %1004 = vmatpush3.msra.mxu0 %v384_v51  ;;  %v648_v40 = vld [vmem:[#allocation7 + $0x118] sm:$0xff]  ;;  %v615_v44 = vld [vmem:[#allocation7 + $0x10] sm:$0xff]  ;;  %v630_v46 = vld [vmem:[#allocation7 + $0x88] sm:$0xff] }
  0x75   : > { %1115 = vmatprep.subr.mxu1 %v416_v52  ;;  %1005 = vmatprep.subr.mxu0 %v399_v55  ;;  %v647_v45 = vld [vmem:[#allocation7 + $0x110] sm:$0xff]  ;;  %v614_v47 = vld [vmem:[#allocation7 + $0x8] sm:$0xff]  ;;  %v629_v49 = vld [vmem:[#allocation7 + $0x80] sm:$0xff] }
  0x76   : > { %495 = vmatprep.mubr.f32.mxu0 %v1581_v41  ;;  %1006 = vmatpush3.msra.mxu0 %v383_v57  ;;  %v646_v48 = vld [vmem:[#allocation7 + $0x108] sm:$0xff]  ;;  %v613_v50 = vld [vmem:[#allocation7] sm:$0xff] }
  0x77   : > { %1116 = vmatpush3.msra.mxu1 %v416_v52  ;;  %955 = vmatmul.mubr.msk.f32.vlgmr.msra.gmra.mxu0 %vm1596_vm2, %v365_v58  ;;  %v645_v51 = vld [vmem:[#allocation7 + $0x100] sm:$0xff] }
  0x78   : > { %1117 = vmatprep.subr.mxu1 %v415_v60  ;;  %1119 = vmatprep.mubr.f32.mxu1 %v375_v61  ;;  %v958_v58 = vld [vmem:[%s1695_s2] ss:$0 sm:$0xff] }
  0x79   : > { %1118 = vmatpush3.msra.mxu1 %v415_v60  ;;  %500 = vmatprep.mubr.f32.mxu0 %v1584_v42  ;;  %v964_v59 = vld [vmem:[%s1698_s5] ss:$0 sm:$0xff] }
  0x7a   : > { %1120 = vmatmul.mubr.msk.f32.vlgmr.msra.gmra.mxu1 %vm1605_vm3, %v376_v62  ;;  %1031 = vmatprep.subr.mxu0 %v644_v0  ;;  %v959_v62 = vld [vmem:[%s1696_s3] ss:$0 sm:$0xff] }
  0x7b   : > { %1122 = vmatprep.subr.mxu1 %v660_v1  ;;  %501 = vmatmul.mubr.f32.gmra.mxu0 %v364_v2  ;;  %v965_v63 = vld [vmem:[%s1699_s6] ss:$0 sm:$0xff] }
  0x7c   : > { %1123 = vmatpush3.msra.mxu1 %v660_v1  ;;  %1032 = vmatpush3.msra.mxu0 %v628_v3 }
  0x7d   : > { %1124 = vmatprep.subr.mxu1 %v659_v4  ;;  %1033 = vmatprep.subr.mxu0 %v643_v5 }
  0x7e   : > { %1125 = vmatpush3.msra.mxu1 %v659_v4  ;;  %1034 = vmatpush3.msra.mxu0 %v627_v6 }
  0x7f   : > { %1126 = vmatprep.subr.mxu1 %v658_v7  ;;  %1035 = vmatprep.subr.mxu0 %v642_v8 }
  0x80   : > { %1127 = vmatpush3.msra.mxu1 %v658_v7  ;;  %1036 = vmatpush3.msra.mxu0 %v626_v9 }
  0x81   : > { %1128 = vmatprep.subr.mxu1 %v657_v10  ;;  %1037 = vmatprep.subr.mxu0 %v641_v11 }
  0x82   : > { %1129 = vmatpush3.msra.mxu1 %v657_v10  ;;  %1038 = vmatpush3.msra.mxu0 %v625_v12 }
  0x83   : > { %1130 = vmatprep.subr.mxu1 %v656_v13  ;;  %1039 = vmatprep.subr.mxu0 %v640_v14 }
  0x84   : > { %1131 = vmatpush3.msra.mxu1 %v656_v13  ;;  %1040 = vmatpush3.msra.mxu0 %v624_v15 }
  0x85   : > { %1132 = vmatprep.subr.mxu1 %v655_v16  ;;  %1041 = vmatprep.subr.mxu0 %v639_v17 }
  0x86   : > { %1133 = vmatpush3.msra.mxu1 %v655_v16  ;;  %1042 = vmatpush3.msra.mxu0 %v623_v18 }
  0x87   : > { %1043 = vmatprep.subr.mxu0 %v638_v19  ;;  %1134 = vmatprep.subr.mxu1 %v654_v21 }
  0x88   : > { %1044 = vmatpush3.msra.mxu0 %v622_v20  ;;  %1135 = vmatpush3.msra.mxu1 %v654_v21 }
  0x89   : > { %1045 = vmatprep.subr.mxu0 %v637_v22  ;;  %1136 = vmatprep.subr.mxu1 %v653_v24 }
  0x8a   : > { %1046 = vmatpush3.msra.mxu0 %v621_v23  ;;  %1137 = vmatpush3.msra.mxu1 %v653_v24 }
  0x8b   : > { %1047 = vmatprep.subr.mxu0 %v636_v25  ;;  %1138 = vmatprep.subr.mxu1 %v652_v27 }
  0x8c   : > { %1048 = vmatpush3.msra.mxu0 %v620_v26  ;;  %1139 = vmatpush3.msra.mxu1 %v652_v27 }
  0x8d   : > { %1049 = vmatprep.subr.mxu0 %v635_v28  ;;  %1140 = vmatprep.subr.mxu1 %v651_v30 }
  0x8e   : > { %1050 = vmatpush3.msra.mxu0 %v619_v29  ;;  %1141 = vmatpush3.msra.mxu1 %v651_v30 }
  0x8f   : > { %1051 = vmatprep.subr.mxu0 %v634_v31  ;;  %1142 = vmatprep.subr.mxu1 %v650_v33 }
  0x90   : > { %1052 = vmatpush3.msra.mxu0 %v618_v32  ;;  %1143 = vmatpush3.msra.mxu1 %v650_v33 }
  0x91   : > { %1053 = vmatprep.subr.mxu0 %v633_v34  ;;  %1144 = vmatprep.subr.mxu1 %v649_v37 }
  0x92   : > { %1054 = vmatpush3.msra.mxu0 %v617_v36  ;;  %1145 = vmatpush3.msra.mxu1 %v649_v37 }
  0x93   : > { %1055 = vmatprep.subr.mxu0 %v632_v38  ;;  %1146 = vmatprep.subr.mxu1 %v648_v40 }
  0x94   : > { %1056 = vmatpush3.msra.mxu0 %v616_v39  ;;  %1147 = vmatpush3.msra.mxu1 %v648_v40 }
  0x95   : > { %1057 = vmatprep.subr.mxu0 %v631_v43  ;;  %1148 = vmatprep.subr.mxu1 %v647_v45 }
  0x96   : > { %1058 = vmatpush3.msra.mxu0 %v615_v44  ;;  %1149 = vmatpush3.msra.mxu1 %v647_v45 }
  0x97   : > { %1059 = vmatprep.subr.mxu0 %v630_v46  ;;  %1150 = vmatprep.subr.mxu1 %v646_v48 }
  0x98   : > { %1060 = vmatpush3.msra.mxu0 %v614_v47  ;;  %1151 = vmatpush3.msra.mxu1 %v646_v48 }
  0x99   : > { %1061 = vmatprep.subr.mxu0 %v629_v49  ;;  %1152 = vmatprep.subr.mxu1 %v645_v51 }
  0x9a   : > { %1062 = vmatpush3.msra.mxu0 %v613_v50  ;;  %1153 = vmatpush3.msra.mxu1 %v645_v51 }
 0x137   : > { %v1007_v52 = vpop.f32.mrf.mxu0 }
 0x139   : > { %v1008_v53 = vpop.f32.mrf.mxu0 }
 0x13a   : > { %v1121_v54 = vpop.f32.mrf.mxu1  ;;  %v1009_v55 = vadd.f32 %v1008_v53, %v1007_v52 }
 0x13b   : > { %v1010_v56 = vpop.f32.mrf.mxu0 }
 0x13c   : > { %v572_v57 = vpop.f32.mrf.mxu1 }
 0x13d   : > { %v573_v60 = vadd.f32 %v1009_v55, %v572_v57  ;;  %v1011_v61 = vpop.f32.mrf.mxu0 }
 0x13e   : > { %v1012_v1 = vadd.f32 %v1011_v61, %v1010_v56 }
 0x13f   : > { %v588_v0 = vmul.f32 %v958_v58, %v573_v60 }
 0x140   : > { %v578_v2 = vadd.f32 %v1121_v54, %v1012_v1 }
 0x141   : > { %v597_v3 = vadd.f32 %v959_v62, %v588_v0 }
 0x142   : > { %v589_v4 = vmul.f32 %v958_v58, %v578_v2 }
 0x143   : > { %v599_v5 = vmax.f32 %v597_v3, 0.0 }
 0x144   : > { %v598_v6 = vadd.f32 %v959_v62, %v589_v4 }
 0x145   : > { %725 = vmatprep.mubr.f32.mxu0 %v599_v5  ;;  %v601_v8 = vrot.slane %v599_v5, 7  ;;  %v607_v10 = vrot.slane %v599_v5, 1 }
 0x146   : > { %v600_v7 = vmax.f32 %v598_v6, 0.0 }
 0x148   : > { %v602_v9 = vrot.slane %v600_v7, 7  ;;  %v608_v11 = vrot.slane %v600_v7, 1 }
 0x14a   : > { %v604_v12 = vsel %vm363_vm0, %v602_v9, %v601_v8  ;;  %v609_v13 = vsel %vm374_vm1, %v607_v10, %v608_v11  ;;  %v610_v14 = vsel %vm374_vm1, %v608_v11, %v607_v10  ;;  %v603_v15 = vsel %vm363_vm0, %v601_v8, %v602_v9 }
 0x14b   : > { %961 = vmatmul.mubr.msk.f32.vlgmr.msra.gmra.mxu0 %vm1596_vm2, %v604_v12  ;;  %1154 = vmatprep.mubr.f32.mxu1 %v609_v13 }
 0x14c   : > { %730 = vmatprep.mubr.f32.mxu0 %v600_v7  ;;  %1155 = vmatmul.mubr.msk.f32.vlgmr.msra.gmra.mxu1 %vm1605_vm3, %v610_v14 }
 0x14f   : > { %731 = vmatmul.mubr.f32.gmra.mxu0 %v603_v15 }
 0x20b   : > { %v1063_v16 = vpop.f32.mrf.mxu0 }
 0x20c   : > { %v1156_v17 = vpop.f32.mrf.mxu1 }
 0x20d   : > { %v1064_v18 = vpop.f32.mrf.mxu0 }
 0x20e   : > { %v1065_v19 = vadd.f32 %v1064_v18, %v1063_v16  ;;  %v802_v20 = vpop.f32.mrf.mxu1 }
 0x20f   : > { %v1066_v21 = vpop.f32.mrf.mxu0 }
 0x210   : > { %v803_v22 = vadd.f32 %v1065_v19, %v802_v20 }
 0x211   : > { %v1067_v35 = vpop.f32.mrf.mxu0 }
 0x212   : > { %v818_v23 = vmul.f32 %v964_v59, %v803_v22  ;;  %v1068_v24 = vadd.f32 %v1067_v35, %v1066_v21 }
 0x214   : > { %v827_v25 = vadd.f32 %v965_v63, %v818_v23  ;;  %v808_v26 = vadd.f32 %v1156_v17, %v1068_v24 }
 0x216   : > { %v829_v27 = vadd.f32 %v827_v25, %v1581_v41  ;;  %v819_v28 = vmul.f32 %v964_v59, %v808_v26 }
 0x218   : > { %v831_v29 = vmax.f32 %v829_v27, 0.0  ;;  %v828_v30 = vadd.f32 %v965_v63, %v819_v28 }
 0x21a   : > { %833 = vst [vmem:[%s325_s16] sm:$0xff] %v831_v29  ;;  %v830_v31 = vadd.f32 %v828_v30, %v1584_v42 }
 0x21c   : > { %v832_v41 = vmax.f32 %v830_v31, 0.0 }
 0x21e   : > { %834 = vst [vmem:[%s325_s16 + $0x8] sm:$0xff] %v832_v41 }
 0x21f   : > { %1321 = shalt.err (!%p1318_p3)
}
 0x220   : > { %s1322_s29 = scalar_lea.hbm %s1648_s30, 256  ;;  %s1326_s13 = scalar_lea.hbm %s1700_s7, 512 }
 0x221   : > { %p1323_p11 = scmp.ne.s32.totalorder %s1648_s30, %s1322_s29  ;;  %p1327_p4 = scmp.lt.s32.totalorder %s1648_s30, %s1700_s7 }
 0x222   : > { %p1328_p6 = scmp.lt.s32.totalorder %s1326_s13, %s1322_s29 }
 0x223   : > { %p1324_p9 = pnand %p1323_p11, %p1725_p2 }
 0x224   : > { %p1329_p8 = por %p1328_p6, %p1327_p4 }
 0x225   : > { %p1325_p1 = pneg %p1324_p9 }
 0x227   : > { %p1330_p5 = pnand %p1329_p8, %p1325_p1 }
 0x229   : > { %1333 = shalt.err (!%p1330_p5)
}
 0x22a   : > { %s1384_s15 = smov 128   ;;  %s1385_s10 = smov 8  }
 0x22b   : > { %1167 = dma.vmem_to_hbm [thread:$0]  (%p1725_p2), %s1650_s18, 256, %s1648_s30, %s836_s9, %s1384_s15, %s1384_s15, %s1385_s10  }
 0x22c PF: > { %s864_s28 = sand.u32 1, %s1364_s24   ;;  %p1726_p7 = scmp.ne.s32.totalorder %s1709_s8, 0 }
 0x22d   : > { %p1727_p12 = scmp.ge.s32.totalorder %s1376_s27, 2  ;;  %s865_s1 = scalar_lea.sflag [#allocation4], %s864_s28 }
 0x22f   : > { %p1181_p13 = pnand %p1727_p12, %p1726_p7 }
 0x231   : > { %p1182_p0 = pneg %p1181_p13 }
 0x233   : > { %1359 = dma.done.wait (%p1182_p0), %s865_s1, 256  }
 0x234   : > { %1361 = vsyncadd (%p1182_p0), %s865_s1, 4294967040  ;;  %p21_p10 = scmp.ge.s32.totalorder %s1504_s23, 4   ;;  %s1728_s24 = smov %s1368_s25 }
 0x235   : > { %s1729_s25 = smov %s1372_s26  ;;  %s1730_s26 = smov %s1520_s12 }
 0x236   : > { %s1731_s27 = smov %s1504_s23  ;;  %23 = sbr.rel (!%p21_p10) target bundleno = 8 (0x8), region = 101 }
 0x23b   :  { %870 = vsyncpa [#allocation3], 1 }
 0x23c   :  { %872 = vsyncpa [#allocation3 + $0x1], 1 }
 0x23d   :  { %873 = vsyncpa [#allocation6], 1 }
 0x23e   :  { %874 = vsyncpa [#allocation4], 1 }
 0x23f   :  { %876 = vsyncpa [#allocation4 + $0x1], 1 }

</bundles_post_ra>
